<compile_context>
chip_gen: v7x
topology: tpu7x:2x2x1
jax: 0.10.0
libtpu: 0.0.40
codegen_flags: <defaults>
</compile_context>

<pallas_src>
import jax
import jax.numpy as jnp
from jax.experimental import pallas as pl
from jax.experimental.pallas import tpu as pltpu

_HI = jax.lax.Precision.HIGHEST  # only used by the pure-JAX reference


def _full_spec(shape):
    """BlockSpec mapping the whole array as one block (grid=(1,))."""
    return pl.BlockSpec(shape, lambda i, s=shape: (0,) * len(s))


# ----------------------------------------------------------------------------
# Bilinear x2 upsample (align_corners=True) as two large matmuls.
# ----------------------------------------------------------------------------
def _interp_matrix(n_in, n_out):
    """(n_out, n_in) interpolation matrix for bilinear align_corners=True."""
    if n_in == 1:
        return jnp.ones((n_out, 1), jnp.float32)
    src = jnp.arange(n_out, dtype=jnp.float32) * (n_in - 1) / (n_out - 1)
    i0 = jnp.clip(jnp.floor(src).astype(jnp.int32), 0, n_in - 1)
    i1 = jnp.minimum(i0 + 1, n_in - 1)
    w = src - i0.astype(jnp.float32)
    oh0 = jax.nn.one_hot(i0, n_in, dtype=jnp.float32)
    oh1 = jax.nn.one_hot(i1, n_in, dtype=jnp.float32)
    return (1.0 - w)[:, None] * oh0 + w[:, None] * oh1


def _upsample_kernel(x_ref, a_ref, bt_ref, o_ref):
    # x_ref: (N*C, H1, W1), a_ref: (H2, H1), bt_ref: (W1, W2), o_ref: (N*C, H2, W2)
    NC, H1, W1 = x_ref.shape
    H2 = a_ref.shape[0]
    W2 = bt_ref.shape[1]

    # H-interp: one batched matmul over the fused (N*C) axis.
    a_b = jnp.broadcast_to(a_ref[...][None, :, :], (NC, H2, H1))
    t = jax.lax.dot_general(
        a_b, x_ref[...],
        dimension_numbers=(((2,), (1,)), ((0,), (0,))),
        preferred_element_type=jnp.float32)                       # (NC, H2, W1)

    # W-interp: one large 2-D matmul.
    u = jnp.dot(t.reshape(NC * H2, W1), bt_ref[...],
                preferred_element_type=jnp.float32)               # (NC*H2, W2)
    o_ref[...] = u.reshape(NC, H2, W2)


def bilinear_upsample_x2(x):
    """x: (N, C, H, W) float32 -> (N, C, 2H, 2W)."""
    N, C, H, W = x.shape
    H2, W2 = 2 * H, 2 * W
    A = _interp_matrix(H, H2)              # (H2, H)
    Bt = _interp_matrix(W, W2).T           # (W, W2)
    xr = x.reshape(N * C, H, W)            # contiguous reshape: free, no copy

    out = pl.pallas_call(
        _upsample_kernel,
        out_shape=jax.ShapeDtypeStruct((N * C, H2, W2), jnp.float32),
        grid=(1,),
        in_specs=[_full_spec(xr.shape), _full_spec(A.shape), _full_spec(Bt.shape)],
        out_specs=_full_spec((N * C, H2, W2)),
        compiler_params=pltpu.CompilerParams(
            dimension_semantics=("arbitrary",)),
    )(xr, A, Bt)
    return out.reshape(N, C, H2, W2)


# ----------------------------------------------------------------------------
# DoubleConv: (conv3x3 no-bias -> BatchNorm2d (batch stats) -> ReLU) x2
# Fuses the channel concat + 1px zero padding; each conv is ONE packed matmul.
# ----------------------------------------------------------------------------
def _double_conv_kernel(x2_ref, x1_ref, w1_ref, g1_ref, b1_ref,
                        w2_ref, g2_ref, b2_ref, out_ref,
                        xpad_ref, cols1_ref, h1pad_ref, cols2_ref, *, eps=1e-5):
    N, H, W, C2 = x2_ref.shape
    C1 = x1_ref.shape[3]
    Cin = C1 + C2
    Cmid = w1_ref.shape[1]          # w1_ref: (9*Cin, Cmid)
    NHW = N * H * W
    inv_nhw = 1.0 / float(NHW)

    def zero_halo(pref, c):
        # zero only the 1-pixel border of the (N, H+2, W+2, c) padded scratch
        pref[:, 0:1, :, :] = jnp.zeros((N, 1, W + 2, c), jnp.float32)
        pref[:, H + 1:H + 2, :, :] = jnp.zeros((N, 1, W + 2, c), jnp.float32)
        pref[:, 1:H + 1, 0:1, :] = jnp.zeros((N, H, 1, c), jnp.float32)
        pref[:, 1:H + 1, W + 1:W + 2, :] = jnp.zeros((N, H, 1, c), jnp.float32)

    def im2col(pref, cref, c):
        # single packed im2col buffer: columns ordered (kh, kw, channel)
        xp = pref[...]                                       # (N, H+2, W+2, c)
        for kh in range(3):
            for kw in range(3):
                j = (3 * kh + kw) * c
                cref[:, j:j + c] = xp[:, kh:kh + H, kw:kw + W, :].reshape(NHW, c)

    # ---- fused zero-pad + channel concat: torch.cat([x2, x1], dim=C) ----
    zero_halo(xpad_ref, Cin)
    xpad_ref[:, 1:H + 1, 1:W + 1, 0:C2] = x2_ref[...]
    xpad_ref[:, 1:H + 1, 1:W + 1, C2:Cin] = x1_ref[...]

    # ---- conv1: one matmul, packed contraction K = 9*Cin ----
    im2col(xpad_ref, cols1_ref, Cin)
    h1 = jnp.dot(cols1_ref[...], w1_ref[...],
                 preferred_element_type=jnp.float32)          # (NHW, Cmid)

    # ---- BatchNorm1 (training batch stats, single-pass sums) + ReLU ----
    s1 = jnp.sum(h1, axis=0, keepdims=True)                   # (1, Cmid)
    q1 = jnp.sum(h1 * h1, axis=0, keepdims=True)
    mu1 = s1 * inv_nhw
    var1 = jnp.maximum(q1 * inv_nhw - mu1 * mu1, 0.0)
    h1 = (h1 - mu1) * jax.lax.rsqrt(var1 + eps) * g1_ref[...] + b1_ref[...]
    h1 = jnp.maximum(h1, 0.0)

    # ---- conv2: packed K = 9*Cmid, lane-dense output (Cout, N*H*W) ----
    zero_halo(h1pad_ref, Cmid)
    h1pad_ref[:, 1:H + 1, 1:W + 1, :] = h1.reshape(N, H, W, Cmid)
    im2col(h1pad_ref, cols2_ref, Cmid)
    h2 = jax.lax.dot_general(
        w2_ref[...], cols2_ref[...],
        dimension_numbers=(((1,), (1,)), ((), ())),           # W @ cols^T
        preferred_element_type=jnp.float32)                   # (Cout, NHW)

    # ---- BatchNorm2 + ReLU, lane-dense store ----
    s2 = jnp.sum(h2, axis=1, keepdims=True)                   # (Cout, 1)
    q2 = jnp.sum(h2 * h2, axis=1, keepdims=True)
    mu2 = s2 * inv_nhw
    var2 = jnp.maximum(q2 * inv_nhw - mu2 * mu2, 0.0)
    h2 = (h2 - mu2) * jax.lax.rsqrt(var2 + eps) * g2_ref[...] + b2_ref[...]
    out_ref[...] = jnp.maximum(h2, 0.0)


def double_conv(x2_nhwc, x1_nhwc, w1p, g1, b1, w2p, g2, b2):
    """x2/x1: (N, H, W, C) NHWC skip / upsampled inputs.
    w1p: (9*Cin, Cmid), w2p: (Cout, 9*Cmid); g1/b1: (1, Cmid); g2/b2: (Cout, 1).
    Returns lane-dense (Cout, N*H*W)."""
    N, H, W, C2 = x2_nhwc.shape
    C1 = x1_nhwc.shape[3]
    Cin = C1 + C2
    Cmid = w1p.shape[1]
    Cout = w2p.shape[0]
    NHW = N * H * W

    return pl.pallas_call(
        _double_conv_kernel,
        out_shape=jax.ShapeDtypeStruct((Cout, NHW), jnp.float32),
        grid=(1,),
        in_specs=[_full_spec(x2_nhwc.shape), _full_spec(x1_nhwc.shape),
                  _full_spec(w1p.shape), _full_spec(g1.shape), _full_spec(b1.shape),
                  _full_spec(w2p.shape), _full_spec(g2.shape), _full_spec(b2.shape)],
        out_specs=_full_spec((Cout, NHW)),
        scratch_shapes=[
            pltpu.VMEM((N, H + 2, W + 2, Cin), jnp.float32),    # padded concat input
            pltpu.VMEM((NHW, 9 * Cin), jnp.float32),            # im2col buffer, conv1
            pltpu.VMEM((N, H + 2, W + 2, Cmid), jnp.float32),   # padded h1
            pltpu.VMEM((NHW, 9 * Cmid), jnp.float32),           # im2col buffer, conv2
        ],
        compiler_params=pltpu.CompilerParams(
            dimension_semantics=("arbitrary",)),
    )(x2_nhwc, x1_nhwc, w1p, g1, b1, w2p, g2, b2)


# ----------------------------------------------------------------------------
# Up module (bilinear=True branch)
# ----------------------------------------------------------------------------
class UpPallas:
    def __init__(self, in_channels, out_channels, key):
        mid = in_channels // 2
        k1, k2 = jax.random.split(key)
        # conv weights in PyTorch OIHW layout; deterministic synthetic init
        self.w1 = 0.1 * jax.random.normal(k1, (mid, in_channels, 3, 3), jnp.float32)
        self.w2 = 0.1 * jax.random.normal(k2, (out_channels, mid, 3, 3), jnp.float32)
        # packed weights: one contraction of size 9*Cin per conv, (kh, kw, ci) order
        self.w1p = jnp.transpose(self.w1, (2, 3, 1, 0)).reshape(9 * in_channels, mid)
        self.w2p = jnp.transpose(self.w2, (0, 2, 3, 1)).reshape(out_channels, 9 * mid)
        # BatchNorm affine params (PyTorch init: gamma=1, beta=0)
        self.g1 = jnp.ones((1, mid), jnp.float32)
        self.b1 = jnp.zeros((1, mid), jnp.float32)
        self.g2 = jnp.ones((out_channels, 1), jnp.float32)
        self.b2 = jnp.zeros((out_channels, 1), jnp.float32)

    def __call__(self, x1, x2):
        # x1: (N, C1, H1, W1), x2: (N, C2, H2, W2) in NCHW (PyTorch convention)
        N = x1.shape[0]
        Cout = self.w2p.shape[0]
        x1u = bilinear_upsample_x2(x1)                       # (N, C1, 2H1, 2W1)
        diffY = x2.shape[2] - x1u.shape[2]
        diffX = x2.shape[3] - x1u.shape[3]
        if diffY or diffX:                                   # rare; tiny wrapper pad
            x1u = jnp.pad(x1u, ((0, 0), (0, 0),
                                (diffY // 2, diffY - diffY // 2),
                                (diffX // 2, diffX - diffX // 2)))
        H, W = x2.shape[2], x2.shape[3]
        # remaining layout glue: small NCHW->NHWC transposes of the two inputs
        x2n = jnp.transpose(x2, (0, 2, 3, 1))
        x1n = jnp.transpose(x1u, (0, 2, 3, 1))
        out = double_conv(x2n, x1n, self.w1p, self.g1, self.b1,
                          self.w2p, self.g2, self.b2)        # (Cout, N*H*W)
        return jnp.transpose(out.reshape(Cout, N, H, W), (1, 0, 2, 3))


# ----------------------------------------------------------------------------
# Pure-JAX reference (for correctness check only)
# ----------------------------------------------------------------------------
def ref_up(x1, x2, m):
    A = _interp_matrix(x1.shape[2], 2 * x1.shape[2])
    B = _interp_matrix(x1.shape[3], 2 * x1.shape[3])
    up = jnp.einsum('oh,nchw->ncow', A, x1, precision=_HI)
    up = jnp.einsum('pw,ncow->ncop', B, up, precision=_HI)
    diffY = x2.shape[2] - up.shape[2]
    diffX = x2.shape[3] - up.shape[3]
    up = jnp.pad(up, ((0, 0), (0, 0),
                      (diffY // 2, diffY - diffY // 2),
                      (diffX // 2, diffX - diffX // 2)))
    x = jnp.concatenate([x2, up], axis=1)

    def cbr(h, w, g, b):
        y = jax.lax.conv_general_dilated(
            h, w, (1, 1), 'SAME',
            dimension_numbers=('NCHW', 'OIHW', 'NCHW'), precision=_HI)
        mu = y.mean(axis=(0, 2, 3), keepdims=True)
        var = ((y - mu) ** 2).mean(axis=(0, 2, 3), keepdims=True)
        y = (y - mu) * jax.lax.rsqrt(var + 1e-5)
        y = y * g.reshape(1, -1, 1, 1) + b.reshape(1, -1, 1, 1)
        return jnp.maximum(y, 0.0)

    h = cbr(x, m.w1, m.g1, m.b1)
    h = cbr(h, m.w2, m.g2, m.b2)
    return h


if __name__ == "__main__":
    key = jax.random.PRNGKey(0)
    kx1, kx2, kp = jax.random.split(key, 3)

    in_channels, out_channels = 8, 4          # Up(8, 4, bilinear=True)
    N, H1, W1 = 2, 8, 8
    # x1 comes from the deeper level (in_channels//2 ch), x2 is the skip connection
    x1 = jax.random.normal(kx1, (N, in_channels // 2, H1, W1), jnp.float32)
    x2 = jax.random.normal(kx2, (N, in_channels // 2, 2 * H1, 2 * W1), jnp.float32)

    up = UpPallas(in_channels, out_channels, kp)
    y = up(x1, x2)
    jax.block_until_ready(y)

    assert y.shape == (N, out_channels, 2 * H1, 2 * W1), y.shape
    y_ref = ref_up(x1, x2, up)
    max_err = float(jnp.max(jnp.abs(y - y_ref)))
    # kernels use default MXU precision (HIGHEST dropped per perf review);
    # reference is computed at HIGHEST, so allow a modest tolerance.
    assert jnp.allclose(y, y_ref, atol=5e-2, rtol=5e-2), max_err

    print("KERNEL_OK")
</pallas_src>

<mosaic_0001>
module attributes {stable_mosaic.version = 11 : i64} {
  func.func @_upsample_kernel(%arg0: i32, %arg1: memref<8x8x8xf32, #tpu.memory_space<vmem>>, %arg2: memref<16x8xf32, #tpu.memory_space<vmem>>, %arg3: memref<8x16xf32, #tpu.memory_space<vmem>>, %arg4: memref<8x16x16xf32, #tpu.memory_space<vmem>>) attributes {dimension_semantics = [#tpu.dimension_semantics<arbitrary>], iteration_bounds = array<i64: 1>, scalar_prefetch = 0 : i64, scratch_operands = 0 : i64, tpu.core_type = #tpu.core_type<tc>, window_params = [{pipeline_mode = #tpu.pipeline_mode<synchronous>, transform_indices = @transform_0, window_bounds = array<i64: 8, 8, 8>}, {pipeline_mode = #tpu.pipeline_mode<synchronous>, transform_indices = @transform_1, window_bounds = array<i64: 16, 8>}, {pipeline_mode = #tpu.pipeline_mode<synchronous>, transform_indices = @transform_2, window_bounds = array<i64: 8, 16>}, {pipeline_mode = #tpu.pipeline_mode<synchronous>, transform_indices = @transform_3, window_bounds = array<i64: 8, 16, 16>}]} {
    %c0 = arith.constant 0 : index
    %c0_0 = arith.constant 0 : index
    %0 = vector.load %arg2[%c0, %c0_0] : memref<16x8xf32, #tpu.memory_space<vmem>>, vector<16x8xf32>
    %1 = vector.shape_cast %0 : vector<16x8xf32> to vector<1x16x8xf32>
    %2 = vector.shape_cast %1 : vector<1x16x8xf32> to vector<1x16x8xf32>
    %3 = vector.broadcast %2 : vector<1x16x8xf32> to vector<8x16x8xf32>
    %c0_1 = arith.constant 0 : index
    %c0_2 = arith.constant 0 : index
    %c0_3 = arith.constant 0 : index
    %4 = vector.load %arg1[%c0_1, %c0_2, %c0_3] : memref<8x8x8xf32, #tpu.memory_space<vmem>>, vector<8x8x8xf32>
    %cst = arith.constant dense<0.000000e+00> : vector<8x16x8xf32>
    %5 = tpu.matmul %3, %4, %cst {dimension_numbers = #tpu.dot_dimension_numbers<[2], [1], [1], [2], [0, 0, 0, 1, 1, 2], [0], [0]>} : vector<8x16x8xf32>, vector<8x8x8xf32>, vector<8x16x8xf32> -> vector<8x16x8xf32>
    %6 = vector.shape_cast %5 : vector<8x16x8xf32> to vector<128x8xf32>
    %c0_4 = arith.constant 0 : index
    %c0_5 = arith.constant 0 : index
    %7 = vector.load %arg3[%c0_4, %c0_5] : memref<8x16xf32, #tpu.memory_space<vmem>>, vector<8x16xf32>
    %cst_6 = arith.constant dense<0.000000e+00> : vector<128x16xf32>
    %8 = tpu.matmul %6, %7, %cst_6 {dimension_numbers = #tpu.dot_dimension_numbers<[1], [0], [0], [1], [0, 0, 1, 1], [], []>} : vector<128x8xf32>, vector<8x16xf32>, vector<128x16xf32> -> vector<128x16xf32>
    %9 = vector.shape_cast %8 : vector<128x16xf32> to vector<8x16x16xf32>
    %c0_7 = arith.constant 0 : index
    %c0_8 = arith.constant 0 : index
    %c0_9 = arith.constant 0 : index
    %10 = vector.load %arg4[%c0_7, %c0_8, %c0_9] : memref<8x16x16xf32, #tpu.memory_space<vmem>>, vector<8x16x16xf32>
    tpu.vector_store %arg4[%c0_7, %c0_8, %c0_9], %9 {strides = array<i32>} : memref<8x16x16xf32, #tpu.memory_space<vmem>>, vector<8x16x16xf32>,
    return
  }
  func.func @transform_0(%arg0: i32) -> (i32, i32, i32) {
    %c0_i32 = arith.constant 0 : i32
    %c0_i32_0 = arith.constant 0 : i32
    %c0_i32_1 = arith.constant 0 : i32
    %c0_i32_2 = arith.constant 0 : i32
    return %c0_i32, %c0_i32_0, %c0_i32_1 : i32, i32, i32
  }
  func.func @transform_1(%arg0: i32) -> (i32, i32) {
    %c0_i32 = arith.constant 0 : i32
    %c0_i32_0 = arith.constant 0 : i32
    %c0_i32_1 = arith.constant 0 : i32
    return %c0_i32, %c0_i32_0 : i32, i32
  }
  func.func @transform_2(%arg0: i32) -> (i32, i32) {
    %c0_i32 = arith.constant 0 : i32
    %c0_i32_0 = arith.constant 0 : i32
    %c0_i32_1 = arith.constant 0 : i32
    return %c0_i32, %c0_i32_0 : i32, i32
  }
  func.func @transform_3(%arg0: i32) -> (i32, i32, i32) {
    %c0_i32 = arith.constant 0 : i32
    %c0_i32_0 = arith.constant 0 : i32
    %c0_i32_1 = arith.constant 0 : i32
    %c0_i32_2 = arith.constant 0 : i32
    return %c0_i32, %c0_i32_0, %c0_i32_1 : i32, i32, i32
  }
}

</mosaic_0001>

<bundles_post_ra>
// kernel: tpu_custom_call.1
= control target key start
LH: loop header
LB: loop body
LE: loop exit
PB: predicated region body
PF: predicated region fallthrough
CT: control target
= control target key end

     0   :  { %8 = vsyncpa [#allocation3], 0  ;;  %s1178_s0 = inlined_call_operand.hbm [shape: f32[8,8,8], index: 0, kind: input, shape index: {}]   ;;  %s1179_s1 = inlined_call_operand.vmem [shape: f32[16,8], index: 1, kind: input, shape index: {}]   ;;  %s1180_s2 = inlined_call_operand.vmem [shape: f32[8,16], index: 2, kind: input, shape index: {}]   ;;  %s1181_s3 = inlined_call_operand.hbm [shape: f32[8,16,16], index: 3, kind: output, shape index: {}]  }
   0x1   :  { %9 = vsyncpa [#allocation4], 0  ;;  %s1067_s12 = smov [#allocation2]   ;;  %s1019_s16 = scalar_lea.hbm %s1178_s0, 1024 }
   0x2   :  { %s15_s13 = sshll.u32 %s1067_s12, 4  ;;  %p1020_p0 = scmp.ne.s32.totalorder %s1178_s0, %s1019_s16  ;;  %s16_s13 = int_to_ptr.vmem [resolvable:$true] %s15_s13 }
   0x3   :  { %p1023_p1 = scmp.lt.u32.totalorder %s1019_s16, %s1178_s0 }
   0x5   :  { %p1025_p2 = pnand %p1023_p1, %p1020_p0 }
   0x7   :  { %1028 = shalt.err (!%p1025_p2)
}
   0x8   :  { %s1029_s21 = scalar_lea.vmem %s16_s13, 1024  ;;  %p1034_p4 = scmp.lt.s32.totalorder %s16_s13, %s16_s13 }
   0x9   :  { %p1030_p3 = scmp.ne.s32.totalorder %s16_s13, %s1029_s21  ;;  %p1035_p5 = scmp.lt.s32.totalorder %s1029_s21, %s1029_s21 }
   0xb   :  { %p1036_p6 = por %p1035_p5, %p1034_p4 }
   0xd   :  { %p1037_p7 = pnand %p1036_p6, %p1030_p3 }
   0xf   :  { %1040 = shalt.err (!%p1037_p7)
}
  0x10   :  { %s1068_s22 = smov 128   ;;  %s1069_s23 = smov 8  }
  0x11   :  { %21 = dma.hbm_to_vmem [thread:$0]  %s1178_s0, 1024, %s16_s13, [#allocation3], %s1068_s22, %s1068_s22, %s1069_s23  }
  0x12   :  { %1063 = dma.done.wait [#allocation3], 1024  }
  0x13   :  { %1064 = vsyncadd [#allocation3], 4294966272  ;;  %vm39_vm0 = vcmask 64512   ;;  %v31_v0 = vld [vmem:[#allocation2] sm:$0xff]  ;;  %v30_v2 = vld [vmem:[%s1179_s1 + $0x8] sm:$0xff]  ;;  %vm840_vm1 = vcmask 130048  }
  0x14   :  { %v29_v1 = vld [vmem:[%s1179_s1] sm:$0xff]  ;;  %947 = vmatprep.subr.mxu0 %v31_v0  ;;  %v33_v3 = vld [vmem:[#allocation2 + $0x10] sm:$0xff]  ;;  %v32_v4 = vld [vmem:[#allocation2 + $0x8] sm:$0xff] }
  0x15   :  { %949 = vmatprep.mubr.msk.f32.mxu0 %vm39_vm0, %v29_v1  ;;  %948 = vmatpush3.msra.mxu0 %v31_v0  ;;  %v34_v5 = vld [vmem:[#allocation2 + $0x18] sm:$0xff]  ;;  %v35_v6 = vld [vmem:[#allocation2 + $0x20] sm:$0xff]  ;;  %v36_v7 = vld [vmem:[#allocation2 + $0x28] sm:$0xff] }
  0x16   :  { %952 = vmatprep.subr.mxu1 %v32_v4  ;;  %950 = vmatmul.mubr.msk.f32.vlgmr.msra.gmra.mrb[0].mxu0 %vm39_vm0, %v30_v2  ;;  %v37_v8 = vld [vmem:[#allocation2 + $0x30] sm:$0xff]  ;;  %v38_v9 = vld [vmem:[#allocation2 + $0x38] sm:$0xff]  ;;  %v646_v10 = vld [vmem:[%s1180_s2] sm:$0xff]  ;;  %s1070_s2 = smov [#allocation5]  }
  0x17   :  { %957 = vmatprep.subr.mxu0 %v33_v3  ;;  %953 = vmatpush3.msra.mxu1 %v32_v4  ;;  %s862_s30 = sshll.u32 %s1070_s2, 4  ;;  %s863_s30 = int_to_ptr.vmem [resolvable:$true] %s862_s30 }
  0x18   :  { %958 = vmatpush3.msra.mxu0 %v33_v3  ;;  %954 = vmatprep.mubr.msk.f32.mxu1 %vm39_vm0, %v29_v1  ;;  %s1041_s4 = scalar_lea.vmem %s863_s30, 2048  ;;  %p1046_p9 = scmp.lt.s32.totalorder %s863_s30, %s863_s30 }
  0x19   :  { %959 = vmatprep.mubr.msk.f32.mxu0 %vm39_vm0, %v29_v1  ;;  %955 = vmatmul.mubr.msk.f32.vlgmr.msra.gmra.mrb[0].mxu1 %vm39_vm0, %v30_v2  ;;  %p1042_p8 = scmp.ne.s32.totalorder %s863_s30, %s1041_s4  ;;  %p1047_p10 = scmp.lt.s32.totalorder %s1041_s4, %s1041_s4 }
  0x1a   :  { %962 = vmatprep.subr.mxu1 %v34_v5  ;;  %960 = vmatmul.mubr.msk.f32.vlgmr.msra.gmra.mrb[2].mxu0 %vm39_vm0, %v30_v2 }
  0x1b   :  { %967 = vmatprep.subr.mxu0 %v35_v6  ;;  %963 = vmatpush3.msra.mxu1 %v34_v5  ;;  %p1048_p11 = por %p1047_p10, %p1046_p9 }
  0x1c   :  { %968 = vmatpush3.msra.mxu0 %v35_v6  ;;  %964 = vmatprep.mubr.msk.f32.mxu1 %vm39_vm0, %v29_v1 }
  0x1d   :  { %969 = vmatprep.mubr.msk.f32.mxu0 %vm39_vm0, %v29_v1  ;;  %965 = vmatmul.mubr.msk.f32.vlgmr.msra.gmra.mrb[2].mxu1 %vm39_vm0, %v30_v2  ;;  %p1049_p12 = pnand %p1048_p11, %p1042_p8 }
  0x1e   :  { %972 = vmatprep.subr.mxu1 %v36_v7  ;;  %970 = vmatmul.mubr.msk.f32.vlgmr.msra.gmra.mrb[4].mxu0 %vm39_vm0, %v30_v2 }
  0x1f   :  { %973 = vmatpush3.msra.mxu1 %v36_v7  ;;  %974 = vmatprep.mubr.msk.f32.mxu1 %vm39_vm0, %v29_v1 }
  0x20   :  { %977 = vmatprep.subr.mxu0 %v37_v8  ;;  %979 = vmatprep.mubr.msk.f32.mxu0 %vm39_vm0, %v29_v1 }
  0x21   :  { %978 = vmatpush3.msra.mxu0 %v37_v8  ;;  %975 = vmatmul.mubr.msk.f32.vlgmr.msra.gmra.mrb[4].mxu1 %vm39_vm0, %v30_v2 }
  0x22   :  { %982 = vmatprep.subr.mxu1 %v38_v9  ;;  %980 = vmatmul.mubr.msk.f32.vlgmr.msra.gmra.mrb[6].mxu0 %vm39_vm0, %v30_v2 }
  0x23   :  { %983 = vmatpush3.msra.mxu1 %v38_v9  ;;  %984 = vmatprep.mubr.msk.f32.mxu1 %vm39_vm0, %v29_v1 }
  0x24   :  { %987 = vmatprep.subr.mxu0 %v646_v10  ;;  %1013 = vmatprep.subr.mxu1 %v646_v10 }
  0x25   :  { %985 = vmatmul.mubr.msk.f32.vlgmr.msra.gmra.mrb[6].mxu1 %vm39_vm0, %v30_v2  ;;  %988 = vmatpush3.msra.mxu0 %v646_v10 }
  0x26   :  { %1014 = vmatpush3.msra.mxu1 %v646_v10 }
  0xe9   :  { %v951_v11 = vpop.f32.mrb[0].mxu0 }
  0xea   :  { %v112_v12 = vpop.f32.mrb[1].mxu0 }
  0xeb   :  { %989 = vmatprep.mubr.msk.f32.mxu0 %vm39_vm0, %v112_v12 }
  0xec   :  { %990 = vmatmul.mubr.msk.f32.vlgmr.msra.gmra.mrb[8].mxu0 %vm39_vm0, %v951_v11  ;;  %v956_v13 = vpop.f32.mrb[0].mxu1 }
  0xed   :  { %v961_v14 = vpop.f32.mrb[2].mxu0  ;;  %v187_v15 = vpop.f32.mrb[1].mxu1 }
  0xee   :  { %v262_v16 = vpop.f32.mrb[3].mxu0  ;;  %992 = vmatprep.mubr.msk.f32.mxu0 %vm39_vm0, %v187_v15 }
  0xf0   :  { %993 = vmatmul.mubr.msk.f32.gmra.mrb[10].mxu0 %vm39_vm0, %v956_v13  ;;  %v966_v17 = vpop.f32.mrb[2].mxu1 }
  0xf1   :  { %v971_v18 = vpop.f32.mrb[4].mxu0  ;;  %995 = vmatprep.mubr.msk.f32.mxu0 %vm39_vm0, %v262_v16  ;;  %v337_v19 = vpop.f32.mrb[3].mxu1 }
  0xf2   :  { %v412_v20 = vpop.f32.mrb[5].mxu0 }
  0xf3   :  { %1001 = vmatprep.mubr.msk.f32.mxu1 %vm39_vm0, %v412_v20 }
  0xf4   :  { %996 = vmatmul.mubr.msk.f32.gmra.mrb[12].mxu0 %vm39_vm0, %v961_v14  ;;  %1002 = vmatmul.mubr.msk.f32.vlgmr.msra.gmra.mrb[8].mxu1 %vm39_vm0, %v971_v18  ;;  %v976_v21 = vpop.f32.mrb[4].mxu1 }
  0xf5   :  { %998 = vmatprep.mubr.msk.f32.mxu0 %vm39_vm0, %v337_v19  ;;  %v487_v22 = vpop.f32.mrb[5].mxu1  ;;  %v981_v23 = vpop.f32.mrb[6].mxu0 }
  0xf6   :  { %1004 = vmatprep.mubr.msk.f32.mxu1 %vm39_vm0, %v487_v22  ;;  %v562_v24 = vpop.f32.mrb[7].mxu0 }
  0xf8   :  { %999 = vmatmul.mubr.msk.f32.gmra.mrb[14].mxu0 %vm39_vm0, %v966_v17  ;;  %1005 = vmatmul.mubr.msk.f32.gmra.mrb[10].mxu1 %vm39_vm0, %v976_v21  ;;  %v986_v25 = vpop.f32.mrb[6].mxu1 }
  0xf9   :  { %1007 = vmatprep.mubr.msk.f32.mxu1 %vm39_vm0, %v562_v24  ;;  %v637_v26 = vpop.f32.mrb[7].mxu1 }
  0xfc   :  { %1008 = vmatmul.mubr.msk.f32.gmra.mrb[12].mxu1 %vm39_vm0, %v981_v23 }
  0xfd   :  { %1010 = vmatprep.mubr.msk.f32.mxu1 %vm39_vm0, %v637_v26 }
 0x100   :  { %1011 = vmatmul.mubr.msk.f32.gmra.mrb[14].mxu1 %vm39_vm0, %v986_v25 }
 0x1bf   :  { %v991_v27 = vpop.f32.mrb[8].mxu0 }
 0x1c0   :  { %842 = vst.msk [vmem:[#allocation5 + $0x8] sm:$0xff] %vm840_vm1, %v991_v27  ;;  %v761_v28 = vpop.f32.mrb[9].mxu0 }
 0x1c1   :  { %841 = vst.msk [vmem:[#allocation5] sm:$0xff] %vm840_vm1, %v761_v28 }
 0x1c3   :  { %v994_v29 = vpop.f32.mrb[10].mxu0 }
 0x1c4   :  { %844 = vst.msk [vmem:[#allocation5 + $0x18] sm:$0xff] %vm840_vm1, %v994_v29  ;;  %v771_v30 = vpop.f32.mrb[11].mxu0 }
 0x1c5   :  { %843 = vst.msk [vmem:[#allocation5 + $0x10] sm:$0xff] %vm840_vm1, %v771_v30 }
 0x1c7   :  { %v997_v31 = vpop.f32.mrb[12].mxu0  ;;  %v1003_v32 = vpop.f32.mrb[8].mxu1 }
 0x1c8   :  { %846 = vst.msk [vmem:[#allocation5 + $0x28] sm:$0xff] %vm840_vm1, %v997_v31  ;;  %850 = vst.msk [vmem:[#allocation5 + $0x48] sm:$0xff] %vm840_vm1, %v1003_v32  ;;  %v781_v33 = vpop.f32.mrb[13].mxu0  ;;  %v801_v34 = vpop.f32.mrb[9].mxu1 }
 0x1c9   :  { %845 = vst.msk [vmem:[#allocation5 + $0x20] sm:$0xff] %vm840_vm1, %v781_v33  ;;  %849 = vst.msk [vmem:[#allocation5 + $0x40] sm:$0xff] %vm840_vm1, %v801_v34 }
 0x1cb   :  { %v1000_v35 = vpop.f32.mrb[14].mxu0  ;;  %v1006_v36 = vpop.f32.mrb[10].mxu1 }
 0x1cc   :  { %848 = vst.msk [vmem:[#allocation5 + $0x38] sm:$0xff] %vm840_vm1, %v1000_v35  ;;  %852 = vst.msk [vmem:[#allocation5 + $0x58] sm:$0xff] %vm840_vm1, %v1006_v36  ;;  %v791_v37 = vpop.f32.mrb[15].mxu0  ;;  %v811_v38 = vpop.f32.mrb[11].mxu1 }
 0x1cd   :  { %847 = vst.msk [vmem:[#allocation5 + $0x30] sm:$0xff] %vm840_vm1, %v791_v37  ;;  %851 = vst.msk [vmem:[#allocation5 + $0x50] sm:$0xff] %vm840_vm1, %v811_v38 }
 0x1cf   :  { %v1009_v39 = vpop.f32.mrb[12].mxu1 }
 0x1d0   :  { %854 = vst.msk [vmem:[#allocation5 + $0x68] sm:$0xff] %vm840_vm1, %v1009_v39  ;;  %v821_v40 = vpop.f32.mrb[13].mxu1 }
 0x1d1   :  { %853 = vst.msk [vmem:[#allocation5 + $0x60] sm:$0xff] %vm840_vm1, %v821_v40 }
 0x1d3   :  { %v1012_v41 = vpop.f32.mrb[14].mxu1 }
 0x1d4   :  { %856 = vst.msk [vmem:[#allocation5 + $0x78] sm:$0xff] %vm840_vm1, %v1012_v41  ;;  %v831_v42 = vpop.f32.mrb[15].mxu1 }
 0x1d5   :  { %855 = vst.msk [vmem:[#allocation5 + $0x70] sm:$0xff] %vm840_vm1, %v831_v42 }
 0x1d6   :  { %1052 = shalt.err (!%p1049_p12)
}
 0x1d7   :  { %s1053_s7 = scalar_lea.hbm %s1181_s3, 2048 }
 0x1d8   :  { %p1054_p13 = scmp.ne.s32.totalorder %s1181_s3, %s1053_s7  ;;  %p1057_p0 = scmp.lt.u32.totalorder %s1053_s7, %s1181_s3 }
 0x1da   :  { %p1059_p1 = pnand %p1057_p0, %p1054_p13 }
 0x1dc   :  { %1062 = shalt.err (!%p1059_p1)
}
 0x1dd   :  { %868 = dma.vmem_to_hbm [thread:$0]  %s863_s30, 2048, %s1181_s3, [#allocation4], %s1068_s22, %s1068_s22, %s1069_s23  }
 0x1de   :  { %1065 = dma.done.wait [#allocation4], 2048  }
 0x1df   :  { %1066 = vsyncadd [#allocation4], 4294965248 }
 0x1e0   :  { %872 = vsyncpa [#allocation3], 1 }
 0x1e1   :  { %873 = vsyncpa [#allocation4], 1 }

</bundles_post_ra>
